<compile_context>
chip_gen: v7x
topology: tpu7x:2x2x1
jax: 0.10.0
libtpu: 0.0.40
codegen_flags: <defaults>
</compile_context>

<pallas_src>
import jax
import jax.numpy as jnp
from jax.experimental import pallas as pl
from jax.experimental.pallas import tpu as pltpu


def _round_up(n, m):
    return ((n + m - 1) // m) * m


def pada_disc_kernel(x_ref, w1_ref, b1_ref, w2_ref, b2_ref, w3_ref, b3_ref, o_ref):
    # GRL (gradient reversal) is identity in the forward pass.
    x = x_ref[...]                                               # (TM, Fp) bf16

    # ad_layer1 + ReLU  (dropout1 == identity in eval). MXU matmul, f32 acc.
    h1 = jnp.dot(x, w1_ref[...], preferred_element_type=jnp.float32)
    h1 = jnp.maximum(h1 + b1_ref[...], 0.0)                      # (TM, Hp) f32

    # ad_layer2 + ReLU  (dropout2 == identity in eval).
    h2 = jnp.dot(h1.astype(jnp.bfloat16), w2_ref[...],
                 preferred_element_type=jnp.float32)
    h2 = jnp.maximum(h2 + b2_ref[...], 0.0)                      # (TM, Hp) f32

    # ad_layer3: output width 1 -> elementwise multiply + lane reduction
    # (VPU/XLU) instead of an N=1 MXU matmul.  Reduction stays in f32.
    logits = jnp.sum(h2 * w3_ref[...], axis=-1, keepdims=True) + b3_ref[0, 0]

    # Sigmoid epilogue: exp + reciprocal both land on the EUP.
    o_ref[...] = pl.reciprocal(1.0 + jnp.exp(-logits), approx=True).astype(o_ref.dtype)


def pada_discriminator_forward(x, params, *, tm=None):
    """x: (B, feature_dim) float32.  Returns (B, 1) float32 sigmoid probs."""
    w1, b1, w2, b2, w3, b3 = params
    B, F = x.shape
    H = w1.shape[0]

    # Pad feature/hidden dims to the 128-lane quantum; batch tile to sublanes.
    Fp = _round_up(F, 128)
    Hp = _round_up(H, 128)
    if tm is None:
        tm = min(256, _round_up(B, 8))       # 256-row tiles for big batches
    Bp = _round_up(B, tm)

    # Pre-transpose weights to (in, out), cast operands to bf16 (f32 accum in
    # kernel), zero-pad everything.  Biases stay f32.
    xp = jnp.zeros((Bp, Fp), jnp.bfloat16).at[:B, :F].set(x.astype(jnp.bfloat16))
    w1t = jnp.zeros((Fp, Hp), jnp.bfloat16).at[:F, :H].set(w1.T.astype(jnp.bfloat16))
    w2t = jnp.zeros((Hp, Hp), jnp.bfloat16).at[:H, :H].set(w2.T.astype(jnp.bfloat16))
    w3r = jnp.zeros((1, Hp), jnp.bfloat16).at[:, :H].set(w3.astype(jnp.bfloat16))
    b1r = jnp.zeros((1, Hp), jnp.float32).at[:, :H].set(b1)
    b2r = jnp.zeros((1, Hp), jnp.float32).at[:, :H].set(b2)
    b3r = b3.reshape(1, 1).astype(jnp.float32)                 # scalar -> SMEM

    # VMEM budget: double-buffered activation tiles + (allocated 2x, copied
    # once) resident weights/biases; cap at v7x's 64 MiB physical VMEM.
    est = (2 * tm * Fp * 2                     # x tiles (bf16)
           + 2 * tm * 128 * 4                  # out tiles (lane-padded f32)
           + 2 * (Fp * Hp + Hp * Hp + 8 * Hp) * 2   # weights (bf16)
           + 2 * 2 * 8 * Hp * 4)               # biases (f32, sublane-padded)
    vmem_limit = min(64 << 20, max(32 << 20, int(est * 1.5)))

    const2d = lambda i: (0, 0)
    out_p = pl.pallas_call(
        pada_disc_kernel,
        out_shape=jax.ShapeDtypeStruct((Bp, 1), jnp.float32),
        grid=(pl.cdiv(Bp, tm),),
        in_specs=[
            pl.BlockSpec((tm, Fp), lambda i: (i, 0)),          # x: batch-tiled
            pl.BlockSpec((Fp, Hp), const2d),                   # w1: resident
            pl.BlockSpec((1, Hp), const2d),                    # b1: resident
            pl.BlockSpec((Hp, Hp), const2d),                   # w2: resident
            pl.BlockSpec((1, Hp), const2d),                    # b2: resident
            pl.BlockSpec((1, Hp), const2d),                    # w3 row: resident
            pl.BlockSpec(memory_space=pltpu.SMEM),             # b3 scalar
        ],
        out_specs=pl.BlockSpec((tm, 1), lambda i: (i, 0)),
        compiler_params=pltpu.CompilerParams(
            dimension_semantics=("parallel",),                 # megacore on v7x
            vmem_limit_bytes=vmem_limit),
    )(xp, w1t, b1r, w2t, b2r, w3r, b3r)
    return out_p[:B]


def init_params(key, feature_dim, hidden_dim):
    """Deterministic init matching the module's __init__:
       weights ~ N(0, 0.01) / N(0, 0.01) / N(0, 0.3), biases = 0."""
    k1, k2, k3 = jax.random.split(key, 3)
    w1 = 0.01 * jax.random.normal(k1, (hidden_dim, feature_dim), jnp.float32)
    b1 = jnp.zeros((hidden_dim,), jnp.float32)
    w2 = 0.01 * jax.random.normal(k2, (hidden_dim, hidden_dim), jnp.float32)
    b2 = jnp.zeros((hidden_dim,), jnp.float32)
    w3 = 0.3 * jax.random.normal(k3, (1, hidden_dim), jnp.float32)
    b3 = jnp.zeros((1,), jnp.float32)
    return (w1, b1, w2, b2, w3, b3)


def reference_forward(x, params):
    """Pure-JAX f32 reference (eval-mode: dropout = identity, GRL = identity)."""
    w1, b1, w2, b2, w3, b3 = params
    h = jnp.maximum(x @ w1.T + b1, 0.0)
    h = jnp.maximum(h @ w2.T + b2, 0.0)
    return jax.nn.sigmoid(h @ w3.T + b3)


if __name__ == "__main__":
    key = jax.random.PRNGKey(0)
    batch, feature_dim, hidden_dim = 8, 32, 32

    kx, kp = jax.random.split(key)
    x = jax.random.normal(kx, (batch, feature_dim), jnp.float32)
    params = init_params(kp, feature_dim, hidden_dim)

    out = pada_discriminator_forward(x, params)
    out = jax.block_until_ready(out)

    ref = reference_forward(x, params)
    assert out.shape == (batch, 1), out.shape
    max_err = float(jnp.max(jnp.abs(out - ref)))
    # bf16 operands + approx reciprocal: tolerance relaxed vs pure-f32 path.
    assert max_err < 5e-3, f"max abs err {max_err}"

    print("KERNEL_OK")
</pallas_src>

<mosaic_0001>
module attributes {stable_mosaic.version = 11 : i64} {
  func.func @pada_disc_kernel(%arg0: i32, %arg1: memref<8x128xbf16, #tpu.memory_space<vmem>>, %arg2: memref<128x128xbf16, #tpu.memory_space<vmem>>, %arg3: memref<1x128xf32, #tpu.memory_space<vmem>>, %arg4: memref<128x128xbf16, #tpu.memory_space<vmem>>, %arg5: memref<1x128xf32, #tpu.memory_space<vmem>>, %arg6: memref<1x128xbf16, #tpu.memory_space<vmem>>, %arg7: memref<1x1xf32, #tpu.memory_space<smem>>, %arg8: memref<8x1xf32, #tpu.memory_space<vmem>>) attributes {dimension_semantics = [#tpu.dimension_semantics<parallel>], iteration_bounds = array<i64: 1>, scalar_prefetch = 0 : i64, scratch_operands = 0 : i64, tpu.core_type = #tpu.core_type<tc>, window_params = [{transform_indices = @transform_0, window_bounds = array<i64: 8, 128>}, {pipeline_mode = #tpu.pipeline_mode<synchronous>, transform_indices = @transform_1, window_bounds = array<i64: 128, 128>}, {pipeline_mode = #tpu.pipeline_mode<synchronous>, transform_indices = @transform_2, window_bounds = array<i64: 1, 128>}, {pipeline_mode = #tpu.pipeline_mode<synchronous>, transform_indices = @transform_3, window_bounds = array<i64: 128, 128>}, {pipeline_mode = #tpu.pipeline_mode<synchronous>, transform_indices = @transform_4, window_bounds = array<i64: 1, 128>}, {pipeline_mode = #tpu.pipeline_mode<synchronous>, transform_indices = @transform_5, window_bounds = array<i64: 1, 128>}, {transform_indices = @transform_6, window_bounds = array<i64: 1, 1>}, {transform_indices = @transform_7, window_bounds = array<i64: 8, 1>}]} {
    %c0 = arith.constant 0 : index
    %c0_0 = arith.constant 0 : index
    %0 = vector.load %arg1[%c0, %c0_0] : memref<8x128xbf16, #tpu.memory_space<vmem>>, vector<8x128xbf16>
    %c0_1 = arith.constant 0 : index
    %c0_2 = arith.constant 0 : index
    %1 = vector.load %arg2[%c0_1, %c0_2] : memref<128x128xbf16, #tpu.memory_space<vmem>>, vector<128x128xbf16>
    %cst = arith.constant dense<0.000000e+00> : vector<8x128xf32>
    %2 = tpu.matmul %0, %1, %cst {dimension_numbers = #tpu.dot_dimension_numbers<[1], [0], [0], [1], [0, 0, 1, 1], [], []>} : vector<8x128xbf16>, vector<128x128xbf16>, vector<8x128xf32> -> vector<8x128xf32>
    %c0_3 = arith.constant 0 : index
    %c0_4 = arith.constant 0 : index
    %3 = vector.load %arg3[%c0_3, %c0_4] : memref<1x128xf32, #tpu.memory_space<vmem>>, vector<1x128xf32>
    %4 = vector.broadcast %3 : vector<1x128xf32> to vector<8x128xf32>
    %5 = arith.addf %2, %4 : vector<8x128xf32>
    %cst_5 = arith.constant 0.000000e+00 : f32
    %6 = vector.broadcast %cst_5 : f32 to vector<8x128xf32>
    %7 = arith.maximumf %5, %6 : vector<8x128xf32>
    %8 = arith.truncf %7 : vector<8x128xf32> to vector<8x128xbf16>
    %c0_6 = arith.constant 0 : index
    %c0_7 = arith.constant 0 : index
    %9 = vector.load %arg4[%c0_6, %c0_7] : memref<128x128xbf16, #tpu.memory_space<vmem>>, vector<128x128xbf16>
    %cst_8 = arith.constant dense<0.000000e+00> : vector<8x128xf32>
    %10 = tpu.matmul %8, %9, %cst_8 {dimension_numbers = #tpu.dot_dimension_numbers<[1], [0], [0], [1], [0, 0, 1, 1], [], []>} : vector<8x128xbf16>, vector<128x128xbf16>, vector<8x128xf32> -> vector<8x128xf32>
    %c0_9 = arith.constant 0 : index
    %c0_10 = arith.constant 0 : index
    %11 = vector.load %arg5[%c0_9, %c0_10] : memref<1x128xf32, #tpu.memory_space<vmem>>, vector<1x128xf32>
    %12 = vector.broadcast %11 : vector<1x128xf32> to vector<8x128xf32>
    %13 = arith.addf %10, %12 : vector<8x128xf32>
    %cst_11 = arith.constant 0.000000e+00 : f32
    %14 = vector.broadcast %cst_11 : f32 to vector<8x128xf32>
    %15 = arith.maximumf %13, %14 : vector<8x128xf32>
    %c0_12 = arith.constant 0 : index
    %c0_13 = arith.constant 0 : index
    %16 = vector.load %arg6[%c0_12, %c0_13] : memref<1x128xbf16, #tpu.memory_space<vmem>>, vector<1x128xbf16>
    %17 = arith.extf %16 : vector<1x128xbf16> to vector<1x128xf32>
    %18 = vector.broadcast %17 : vector<1x128xf32> to vector<8x128xf32>
    %19 = arith.mulf %15, %18 : vector<8x128xf32>
    %cst_14 = arith.constant dense<0.000000e+00> : vector<8xf32>
    %20 = vector.multi_reduction <add>, %19, %cst_14 [1] : vector<8x128xf32> to vector<8xf32>
    %21 = vector.shape_cast %20 : vector<8xf32> to vector<8x1xf32>
    %c0_15 = arith.constant 0 : index
    %c0_16 = arith.constant 0 : index
    %22 = memref.load %arg7[%c0_15, %c0_16] : memref<1x1xf32, #tpu.memory_space<smem>>
    %23 = vector.broadcast %22 : f32 to vector<8x1xf32>
    %24 = arith.addf %21, %23 : vector<8x1xf32>
    %cst_17 = arith.constant 0.000000e+00 : f32
    %25 = vector.broadcast %cst_17 : f32 to vector<8x1xf32>
    %26 = arith.subf %25, %24 : vector<8x1xf32>
    %27 = math.exp %26 : vector<8x1xf32>
    %cst_18 = arith.constant 1.000000e+00 : f32
    %28 = vector.broadcast %cst_18 : f32 to vector<8x1xf32>
    %29 = arith.addf %28, %27 : vector<8x1xf32>
    %30 = tpu.reciprocal %29 {approx = true} : vector<8x1xf32> -> vector<8x1xf32>
    %c0_19 = arith.constant 0 : index
    %c0_20 = arith.constant 0 : index
    %31 = vector.load %arg8[%c0_19, %c0_20] : memref<8x1xf32, #tpu.memory_space<vmem>>, vector<8x1xf32>
    tpu.vector_store %arg8[%c0_19, %c0_20], %30 {strides = array<i32>} : memref<8x1xf32, #tpu.memory_space<vmem>>, vector<8x1xf32>,
    return
  }
  func.func @transform_0(%arg0: i32) -> (i32, i32) {
    %c0_i32 = arith.constant 0 : i32
    %c0_i32_0 = arith.constant 0 : i32
    return %arg0, %c0_i32 : i32, i32
  }
  func.func @transform_1(%arg0: i32) -> (i32, i32) {
    %c0_i32 = arith.constant 0 : i32
    %c0_i32_0 = arith.constant 0 : i32
    %c0_i32_1 = arith.constant 0 : i32
    return %c0_i32, %c0_i32_0 : i32, i32
  }
  func.func @transform_2(%arg0: i32) -> (i32, i32) {
    %c0_i32 = arith.constant 0 : i32
    %c0_i32_0 = arith.constant 0 : i32
    %c0_i32_1 = arith.constant 0 : i32
    return %c0_i32, %c0_i32_0 : i32, i32
  }
  func.func @transform_3(%arg0: i32) -> (i32, i32) {
    %c0_i32 = arith.constant 0 : i32
    %c0_i32_0 = arith.constant 0 : i32
    %c0_i32_1 = arith.constant 0 : i32
    return %c0_i32, %c0_i32_0 : i32, i32
  }
  func.func @transform_4(%arg0: i32) -> (i32, i32) {
    %c0_i32 = arith.constant 0 : i32
    %c0_i32_0 = arith.constant 0 : i32
    %c0_i32_1 = arith.constant 0 : i32
    return %c0_i32, %c0_i32_0 : i32, i32
  }
  func.func @transform_5(%arg0: i32) -> (i32, i32) {
    %c0_i32 = arith.constant 0 : i32
    %c0_i32_0 = arith.constant 0 : i32
    %c0_i32_1 = arith.constant 0 : i32
    return %c0_i32, %c0_i32_0 : i32, i32
  }
  func.func @transform_6(%arg0: i32) -> (i32, i32) {
    %c0_i32 = arith.constant 0 : i32
    %c0_i32_0 = arith.constant 0 : i32
    %c0_i32_1 = arith.constant 0 : i32
    return %c0_i32, %c0_i32_0 : i32, i32
  }
  func.func @transform_7(%arg0: i32) -> (i32, i32) {
    %c0_i32 = arith.constant 0 : i32
    %c0_i32_0 = arith.constant 0 : i32
    return %arg0, %c0_i32 : i32, i32
  }
}

</mosaic_0001>

<bundles_post_ra>
// kernel: tpu_custom_call.1
= control target key start
LH: loop header
LB: loop body
LE: loop exit
PB: predicated region body
PF: predicated region fallthrough
CT: control target
= control target key end

     0   :  { %13 = vsyncpa [#allocation4], 0  ;;  %s595_s0 = inlined_call_operand.hbm [shape: bf16[8,128], index: 0, kind: input, shape index: {}]   ;;  %s596_s1 = inlined_call_operand.hbm [shape: bf16[128,128], index: 1, kind: input, shape index: {}]   ;;  %s597_s2 = inlined_call_operand.vmem [shape: f32[1,128], index: 2, kind: input, shape index: {}]   ;;  %s598_s3 = inlined_call_operand.hbm [shape: bf16[128,128], index: 3, kind: input, shape index: {}]   ;;  %s599_s4 = inlined_call_operand.vmem [shape: f32[1,128], index: 4, kind: input, shape index: {}]   ;;  %s600_s5 = inlined_call_operand.vmem [shape: bf16[1,128], index: 5, kind: input, shape index: {}]   ;;  %s601_s6 = inlined_call_operand.<no memory space> [shape: f32[1,1], index: 6, kind: input, shape index: {}]   ;;  %s602_s7 = inlined_call_operand.vmem [shape: f32[8,1], index: 7, kind: output, shape index: {}]  }
   0x1   :  { %14 = vsyncpa [#allocation6], 0  ;;  %s491_s24 = smov [#allocation5]   ;;  %s421_s28 = scalar_lea.hbm %s596_s1, 1024 }
   0x2   :  { %s30_s25 = sshll.u32 %s491_s24, 4  ;;  %p422_p0 = scmp.ne.s32.totalorder %s596_s1, %s421_s28  ;;  %s31_s25 = int_to_ptr.vmem [resolvable:$true] %s30_s25 }
   0x3   :  { %p425_p1 = scmp.lt.u32.totalorder %s421_s28, %s596_s1 }
   0x5   :  { %p427_p2 = pnand %p425_p1, %p422_p0 }
   0x7   :  { %430 = shalt.err (!%p427_p2)
}
   0x8   :  { %s431_s10 = scalar_lea.vmem %s31_s25, 1024  ;;  %p436_p4 = scmp.lt.s32.totalorder %s31_s25, %s31_s25 }
   0x9   :  { %p432_p3 = scmp.ne.s32.totalorder %s31_s25, %s431_s10  ;;  %p437_p5 = scmp.lt.s32.totalorder %s431_s10, %s431_s10 }
   0xb   :  { %p438_p6 = por %p437_p5, %p436_p4 }
   0xd   :  { %p439_p7 = pnand %p438_p6, %p432_p3 }
   0xf   :  { %442 = shalt.err (!%p439_p7)
}
  0x10   :  { %s492_s11 = smov 64   ;;  %s493_s12 = smov 4  }
  0x11   :  { %36 = dma.hbm_to_vmem [thread:$0]  %s596_s1, 1024, %s31_s25, [#allocation6], %s492_s11, %s492_s11, %s493_s12  }
  0x12   :  { %s494_s15 = smov [#allocation3]   ;;  %s495_s17 = smov [#allocation7]  }
  0x13   :  { %s21_s16 = sshll.u32 %s494_s15, 4  ;;  %s44_s18 = sshll.u32 %s495_s17, 4  ;;  %s22_s16 = int_to_ptr.vmem [resolvable:$true] %s21_s16  ;;  %s45_s18 = int_to_ptr.vmem [resolvable:$true] %s44_s18 }
  0x14   :  { %s443_s21 = scalar_lea.hbm %s595_s0, 64 }
  0x15   :  { %p444_p8 = scmp.ne.s32.totalorder %s595_s0, %s443_s21  ;;  %p447_p9 = scmp.lt.u32.totalorder %s443_s21, %s595_s0 }
  0x17   :  { %p449_p10 = pnand %p447_p9, %p444_p8 }
  0x19   :  { %452 = shalt.err (!%p449_p10)
}
  0x1a   :  { %s453_s1 = scalar_lea.vmem %s22_s16, 64  ;;  %p458_p12 = scmp.lt.s32.totalorder %s22_s16, %s22_s16 }
  0x1b   :  { %p454_p11 = scmp.ne.s32.totalorder %s22_s16, %s453_s1  ;;  %p459_p13 = scmp.lt.s32.totalorder %s453_s1, %s453_s1 }
  0x1d   :  { %p460_p0 = por %p459_p13, %p458_p12 }
  0x1f   :  { %p461_p1 = pnand %p460_p0, %p454_p11 }
  0x21   :  { %464 = shalt.err (!%p461_p1)
}
  0x22   :  { %24 = dma.hbm_to_vmem [thread:$0]  %s595_s0, 64, %s22_s16, [#allocation4]  }
  0x23   :  { %s465_s30 = scalar_lea.hbm %s598_s3, 1024 }
  0x24   :  { %p466_p2 = scmp.ne.s32.totalorder %s598_s3, %s465_s30  ;;  %p469_p3 = scmp.lt.u32.totalorder %s465_s30, %s598_s3 }
  0x26   :  { %p471_p4 = pnand %p469_p3, %p466_p2 }
  0x28   :  { %474 = shalt.err (!%p471_p4)
}
  0x29   :  { %s475_s14 = scalar_lea.vmem %s45_s18, 1024  ;;  %p480_p6 = scmp.lt.s32.totalorder %s45_s18, %s45_s18 }
  0x2a   :  { %p476_p5 = scmp.ne.s32.totalorder %s45_s18, %s475_s14  ;;  %p481_p7 = scmp.lt.s32.totalorder %s475_s14, %s475_s14 }
  0x2c   :  { %p482_p8 = por %p481_p7, %p480_p6 }
  0x2e   :  { %p483_p9 = pnand %p482_p8, %p476_p5 }
  0x30   :  { %486 = shalt.err (!%p483_p9)
}
  0x31   :  { %50 = dma.hbm_to_vmem [thread:$0]  %s598_s3, 1024, %s45_s18, [#allocation6], %s492_s11, %s492_s11, %s493_s12  }
  0x32   :  { %487 = dma.done.wait [#allocation4], 64  }
  0x33   :  { %488 = vsyncadd [#allocation4], 4294967232 }
  0x34   :  { %489 = dma.done.wait [#allocation6], 2048  }
  0x35   :  { %490 = vsyncadd [#allocation6], 4294965248  ;;  %v496_v0 = vmov 0.0   ;;  %vm497_vm0 = vmmov 0   ;;  %v401_v1 = vld [vmem:[#allocation5] sm:$0xff]   ;;  %v402_v2 = vld [vmem:[#allocation5 + $0x8] sm:$0xff]   ;;  %v295_v26 = vlaneseq  ;;  %v303_v40 = vstv %s601_s6 }
  0x36   :  { %354 = vmatprep.subr.bf16.mxu0 %v496_v0  ;;  %370 = vmatprep.mubr.msk.bf16.mxu0 %vm497_vm0, %v496_v0  ;;  %v403_v3 = vld [vmem:[#allocation5 + $0x10] sm:$0xff]   ;;  %v409_v4 = vld [vmem:[#allocation7] sm:$0xff]   ;;  %v404_v5 = vld [vmem:[#allocation5 + $0x18] sm:$0xff]   ;;  %vm310_vm1 = vcmask 7168  }
  0x37   :  { %374 = vmatprep.subr.bf16.mxu1 %v496_v0  ;;  %390 = vmatprep.mubr.msk.bf16.mxu1 %vm497_vm0, %v496_v0  ;;  %v410_v6 = vld [vmem:[#allocation7 + $0x8] sm:$0xff]   ;;  %v405_v7 = vld [vmem:[#allocation5 + $0x20] sm:$0xff]   ;;  %v411_v8 = vld [vmem:[#allocation7 + $0x10] sm:$0xff]   ;;  %v296_v27 = vshrl.u32 %v295_v26, 7 }
  0x38   :  { %355 = vmatpush3.bf16.msra.mxu0 %v401_v1  ;;  %375 = vmatpush3.bf16.msra.mxu1 %v409_v4  ;;  %v406_v9 = vld [vmem:[#allocation5 + $0x28] sm:$0xff]   ;;  %v412_v10 = vld [vmem:[#allocation7 + $0x18] sm:$0xff]   ;;  %v407_v11 = vld [vmem:[#allocation5 + $0x30] sm:$0xff]  }
  0x39   :  { %356 = vmatprep.subr.bf16.mxu0 %v496_v0  ;;  %376 = vmatprep.subr.bf16.mxu1 %v496_v0  ;;  %v413_v12 = vld [vmem:[#allocation7 + $0x20] sm:$0xff]   ;;  %v408_v13 = vld [vmem:[#allocation5 + $0x38] sm:$0xff]   ;;  %v414_v14 = vld [vmem:[#allocation7 + $0x28] sm:$0xff]   ;;  %v297_v30 = vsub.s32 0, %v296_v27 }
  0x3a   :  { %v67_v15 = vld [vmem:[#allocation3] sm:$0xf]  ;;  %v415_v16 = vld [vmem:[#allocation7 + $0x30] sm:$0xff]  }
  0x3b   :  { %v416_v17 = vld [vmem:[#allocation7 + $0x38] sm:$0xff]  }
  0x3c   :  { %357 = vmatpush3.bf16.msra.mxu0 %v402_v2  ;;  %377 = vmatpush3.bf16.msra.mxu1 %v410_v6  ;;  %v318_v18 = vld [vmem:[%s597_s2] ss:$0 sm:$0xff] }
  0x3d   :  { %358 = vmatprep.subr.bf16.mxu0 %v496_v0  ;;  %378 = vmatprep.subr.bf16.mxu1 %v496_v0  ;;  %v293_v28 = vld [vmem:[%s600_s5] sm:$0x1] }
  0x3e   :  { %v294_v29 = vunpack.c.l.bf16 %v293_v28  ;;  %v327_v31 = vld [vmem:[%s599_s4] ss:$0 sm:$0xff] }
  0x40   :  { %359 = vmatpush3.bf16.msra.mxu0 %v403_v3  ;;  %379 = vmatpush3.bf16.msra.mxu1 %v411_v8  ;;  %v298_v35 = vrot.slane %v294_v29, %v297_v30 }
  0x41   :  { %360 = vmatprep.subr.bf16.mxu0 %v496_v0  ;;  %380 = vmatprep.subr.bf16.mxu1 %v496_v0 }
  0x44   :  { %361 = vmatpush3.bf16.msra.mxu0 %v404_v5  ;;  %381 = vmatpush3.bf16.msra.mxu1 %v412_v10 }
  0x45   :  { %362 = vmatprep.subr.bf16.mxu0 %v496_v0  ;;  %382 = vmatprep.subr.bf16.mxu1 %v496_v0 }
  0x48   :  { %363 = vmatpush3.bf16.msra.mxu0 %v405_v7  ;;  %383 = vmatpush3.bf16.msra.mxu1 %v413_v12 }
  0x49   :  { %364 = vmatprep.subr.bf16.mxu0 %v496_v0  ;;  %384 = vmatprep.subr.bf16.mxu1 %v496_v0 }
  0x4c   :  { %365 = vmatpush3.bf16.msra.mxu0 %v406_v9  ;;  %385 = vmatpush3.bf16.msra.mxu1 %v414_v14 }
  0x4d   :  { %366 = vmatprep.subr.bf16.mxu0 %v496_v0  ;;  %386 = vmatprep.subr.bf16.mxu1 %v496_v0 }
  0x50   :  { %367 = vmatpush3.bf16.msra.mxu0 %v407_v11  ;;  %387 = vmatpush3.bf16.msra.mxu1 %v415_v16 }
  0x51   :  { %368 = vmatprep.subr.bf16.mxu0 %v496_v0  ;;  %388 = vmatprep.subr.bf16.mxu1 %v496_v0 }
  0x54   :  { %369 = vmatpush3.bf16.msra.mxu0 %v408_v13  ;;  %389 = vmatpush3.bf16.msra.mxu1 %v416_v17 }
  0x57   :  { %371 = vmatmul.mubr.bf16.vlgmr.msra.gmra.mrb[0].mxu0 %v67_v15 }
 0x12a   :  { %v173_v19 = vpop.f32.mrb[0].mxu0 }
 0x12b   :  { %v174_v20 = vadd.f32 %v318_v18, %v173_v19  ;;  %v372_v21 = vpop.f32.mrb[1].mxu0 }
 0x12c   :  { %v176_v22 = vpop.f32.mrb[2].mxu0 }
 0x12d   :  { %v179_v23 = vmax.f32 %v174_v20, 0.0  ;;  %v373_v24 = vpop.f32.mrb[3].mxu0 }
 0x12f   :  { %v180_v25 = vpack.c.bf16 %v179_v23, %v179_v23 }
 0x131   :  { %391 = vmatmul.mubr.bf16.vlgmr.msra.gmra.mrb[0].mxu1 %v180_v25 }
 0x204   :  { %v286_v32 = vpop.f32.mrb[0].mxu1 }
 0x205   :  { %v287_v33 = vadd.f32 %v327_v31, %v286_v32  ;;  %v392_v34 = vpop.f32.mrb[1].mxu1 }
 0x206   :  { %v289_v36 = vpop.f32.mrb[2].mxu1 }
 0x207   :  { %v292_v37 = vmax.f32 %v287_v33, 0.0  ;;  %v393_v38 = vpop.f32.mrb[3].mxu1 }
 0x209   :  { %v299_v39 = vmul.f32 %v298_v35, %v292_v37 }
 0x20b   :  { %300 = vadd.xlane.f32.xlu0 %v299_v39 }
 0x298   :  { %v301_v41 = vpop.xlane.xlu0 %300 }
 0x299   :  { %v304_v42 = vadd.f32 %v303_v40, %v301_v41 }
 0x29b   :  { %v305_v43 = vsub.f32 0.0, %v304_v42 }
 0x29d   :  { %v306_v44 = vmul.f32 1.442695, %v305_v43 }
 0x29f   :  { %417 = vpow2.f32 %v306_v44 }
 0x2a9   :  { %v418_v45 = vpop.eup %417 }
 0x2aa   :  { %v308_v46 = vadd.f32 1.0, %v418_v45 }
 0x2ac   :  { %419 = vrcp.f32 %v308_v46 }
 0x2b6   :  { %v420_v47 = vpop.eup %419 }
 0x2b7   :  { %311 = vst.msk [vmem:[%s602_s7] sm:$0xff] %vm310_vm1, %v420_v47 }
 0x2b8   :  { %316 = vsyncpa [#allocation4], 1 }
 0x2b9   :  { %317 = vsyncpa [#allocation6], 1 }

</bundles_post_ra>
